<compile_context>
chip_gen: v7x
topology: tpu7x:2x2x1
jax: 0.10.0
libtpu: 0.0.40
codegen_flags: <defaults>
</compile_context>

<pallas_src>
import functools
import math

import jax
import jax.numpy as jnp
from jax.experimental import pallas as pl
from jax.experimental.pallas import tpu as pltpu


# ----------------------------- helpers (used both in-kernel and in reference)


def _layernorm(x, g, b, eps=1e-12):
    mean = jnp.mean(x, axis=-1, keepdims=True)
    var = jnp.mean((x - mean) ** 2, axis=-1, keepdims=True)
    return (x - mean) * jax.lax.rsqrt(var + eps) * g + b


def _gelu_tanh(x):
    c = math.sqrt(2.0 / math.pi)
    return 0.5 * x * (1.0 + jnp.tanh(c * (x + 0.044715 * x * x * x)))


# ------------- fused Pallas kernel: 1-layer encoder + CLS classifier + BCE(pw)
# One grid step == one example.  Weights (bf16) are resident across steps.


def fused_kernel(
    x_ref, mask_ref,
    wqkv_ref, bqkv_ref, wo_ref, bo_ref, g1_ref, be1_ref,
    w1_ref, b1_ref, w2_ref, b2_ref, g2_ref, be2_ref,
    wc_ref, bc_ref, y_ref,
    logits_ref, loss_ref,
    *, pos_weight,
):
    x = x_ref[0]                                   # (S, H) f32, this example
    H = x.shape[1]
    scale = 1.0 / math.sqrt(H)
    xb = x.astype(jnp.bfloat16)                    # bf16 MXU operands

    # --- single-head self-attention (per example, bf16 MXU, f32 accumulate)
    q = (jnp.dot(xb, wqkv_ref[0], preferred_element_type=jnp.float32)
         + bqkv_ref[0]) * scale                    # fold 1/sqrt(H) into q
    k = jnp.dot(xb, wqkv_ref[1], preferred_element_type=jnp.float32) + bqkv_ref[1]
    v = jnp.dot(xb, wqkv_ref[2], preferred_element_type=jnp.float32) + bqkv_ref[2]

    # q @ k^T without materializing a transposed copy of k.
    scores = jax.lax.dot_general(
        q.astype(jnp.bfloat16), k.astype(jnp.bfloat16),
        (((1,), (1,)), ((), ())), preferred_element_type=jnp.float32)   # (S, S)

    # Key-padding mask built in-kernel from the (1, S) mask row (cheap VPU ops).
    key_ok = mask_ref[0] > 0.5                                          # (1, S)
    scores = scores + jnp.where(key_ok, 0.0, -1e9)

    smax = jnp.max(scores, axis=-1, keepdims=True)
    p = jnp.exp(scores - smax)
    denom = jnp.sum(p, axis=-1, keepdims=True)
    attn = p * pl.reciprocal(denom, approx=True)                        # EUP slot

    ctx = jnp.dot(attn.astype(jnp.bfloat16), v.astype(jnp.bfloat16),
                  preferred_element_type=jnp.float32)                   # (S, H)
    attn_out = jnp.dot(ctx.astype(jnp.bfloat16), wo_ref[...],
                       preferred_element_type=jnp.float32) + bo_ref[...]

    h1 = _layernorm(x + attn_out, g1_ref[...], be1_ref[...])            # f32

    ff = _gelu_tanh(jnp.dot(h1.astype(jnp.bfloat16), w1_ref[...],
                            preferred_element_type=jnp.float32) + b1_ref[...])
    ff = jnp.dot(ff.astype(jnp.bfloat16), w2_ref[...],
                 preferred_element_type=jnp.float32) + b2_ref[...]
    hidden = _layernorm(h1 + ff, g2_ref[...], be2_ref[...])             # (S, H)

    # --- CLS pooling + classifier + per-example weighted BCE ----------------
    cls = hidden[0:1, :]                                                # row 0 of tile
    # Linear(H, 1) as VPU broadcast-mul + lane reduce (MXU with N=1 is wasteful).
    z = jnp.sum(cls * wc_ref[...], axis=-1, keepdims=True) + bc_ref[...]   # (1, 1)
    logits_ref[0] = z

    y = y_ref[0]                                                        # (1, 1)
    # BCEWithLogitsLoss with pos_weight (numerically stable):
    #   loss_i = (1 - y)*z + (1 + (pw - 1)*y) * softplus(-z)
    softplus_neg_z = jnp.maximum(-z, 0.0) + jnp.log1p(jnp.exp(-jnp.abs(z)))
    loss_ref[0] = (1.0 - y) * z + (1.0 + (pos_weight - 1.0) * y) * softplus_neg_z


# ------------------------------------------------------------ full forward


@functools.partial(jax.jit, static_argnames=("pos_weight",))
def weighted_binary_classifier_forward(params, input_ids, attention_mask, labels,
                                       pos_weight=2.0):
    B, S = input_ids.shape
    H = params["word_emb"].shape[1]
    F = params["w1"].shape[1]

    # Embedding gather + positional add: plain-JAX glue.
    x = params["word_emb"][input_ids] + params["pos_emb"][None, :, :]   # (B, S, H)
    mask = attention_mask.astype(jnp.float32).reshape(B, 1, S)
    y = labels.astype(jnp.float32).reshape(B, 1, 1)

    bf16 = lambda a: a.astype(jnp.bfloat16)        # bf16 weights for the MXU
    kernel = functools.partial(fused_kernel, pos_weight=float(pos_weight))

    # Weights: constant index_map -> stay resident across the 'parallel' grid.
    resident = lambda shape: pl.BlockSpec(shape, lambda b, _n=len(shape): (0,) * _n)
    # Per-example tensors: leading (batch) block index follows the grid.
    per_ex = lambda shape: pl.BlockSpec(shape, lambda b, _n=len(shape): (b,) + (0,) * (_n - 1))

    logits3, per_loss = pl.pallas_call(
        kernel,
        out_shape=(
            jax.ShapeDtypeStruct((B, 1, 1), jnp.float32),   # per-example logit
            jax.ShapeDtypeStruct((B, 1, 1), jnp.float32),   # per-example BCE term
        ),
        grid=(B,),
        in_specs=[
            per_ex((1, S, H)),                              # x (this example)
            per_ex((1, 1, S)),                              # key-padding mask row
            resident((3, H, H)), resident((3, 1, H)),       # Wq/Wk/Wv (bf16), bq/bk/bv
            resident((H, H)), resident((1, H)),             # Wo (bf16), bo
            resident((1, H)), resident((1, H)),             # ln1 gamma/beta
            resident((H, F)), resident((1, F)),             # W1 (bf16), b1
            resident((F, H)), resident((1, H)),             # W2 (bf16), b2
            resident((1, H)), resident((1, H)),             # ln2 gamma/beta
            resident((1, H)), resident((1, 1)),             # classifier w, b
            per_ex((1, 1, 1)),                              # label (this example)
        ],
        out_specs=(per_ex((1, 1, 1)), per_ex((1, 1, 1))),
        compiler_params=pltpu.CompilerParams(dimension_semantics=("parallel",)),
    )(
        x, mask,
        bf16(params["wqkv"]), params["bqkv"], bf16(params["wo"]), params["bo"],
        params["g1"], params["be1"],
        bf16(params["w1"]), params["b1"], bf16(params["w2"]), params["b2"],
        params["g2"], params["be2"],
        params["wc"], params["bc"], y,
    )

    # Final mean over B per-example losses: tiny plain-JAX reduce, kept outside
    # the kernel so the batch grid axis stays 'parallel' (megacore-friendly).
    loss = jnp.mean(per_loss)
    return loss, logits3.reshape(B, 1)                      # scalar, (B, 1)


# ----------------------------------------------------------- pure-JAX reference


def reference_forward(params, input_ids, attention_mask, labels, pos_weight=2.0):
    x = params["word_emb"][input_ids] + params["pos_emb"][None, :, :]
    m = attention_mask.astype(jnp.float32)[:, None, :]          # (B, 1, S)
    H = x.shape[-1]

    wq, wk, wv = params["wqkv"]
    bq, bk, bv = params["bqkv"]
    q = jnp.einsum("bsh,hd->bsd", x, wq) + bq
    k = jnp.einsum("bsh,hd->bsd", x, wk) + bk
    v = jnp.einsum("bsh,hd->bsd", x, wv) + bv
    scores = jnp.einsum("bqh,bkh->bqk", q, k) / math.sqrt(H) + (1.0 - m) * (-1e9)
    attn = jax.nn.softmax(scores, axis=-1)
    ctx = jnp.einsum("bqk,bkh->bqh", attn, v)
    attn_out = jnp.einsum("bsh,hd->bsd", ctx, params["wo"]) + params["bo"]
    h1 = _layernorm(x + attn_out, params["g1"], params["be1"])
    ff = _gelu_tanh(jnp.einsum("bsh,hf->bsf", h1, params["w1"]) + params["b1"])
    ff = jnp.einsum("bsf,fh->bsh", ff, params["w2"]) + params["b2"]
    hidden = _layernorm(h1 + ff, params["g2"], params["be2"])

    cls = hidden[:, 0, :]
    z = jnp.sum(cls * params["wc"], axis=-1, keepdims=True) + params["bc"]   # (B, 1)
    y = labels.reshape(-1, 1).astype(jnp.float32)
    sp = jnp.maximum(-z, 0.0) + jnp.log1p(jnp.exp(-jnp.abs(z)))
    loss = jnp.mean((1.0 - y) * z + (1.0 + (pos_weight - 1.0) * y) * sp)
    return loss, z


# ----------------------------------------------------------------------- main


def init_params(key, vocab, S, H, F):
    ks = jax.random.split(key, 10)
    n = lambda k, shape: (0.02 * jax.random.normal(k, shape)).astype(jnp.float32)
    return {
        "word_emb": n(ks[0], (vocab, H)),
        "pos_emb": n(ks[1], (S, H)),
        "wqkv": n(ks[2], (3, H, H)),
        "bqkv": jnp.zeros((3, 1, H), jnp.float32),
        "wo": n(ks[3], (H, H)),
        "bo": jnp.zeros((1, H), jnp.float32),
        "g1": jnp.ones((1, H), jnp.float32),
        "be1": jnp.zeros((1, H), jnp.float32),
        "w1": n(ks[4], (H, F)),
        "b1": jnp.zeros((1, F), jnp.float32),
        "w2": n(ks[5], (F, H)),
        "b2": jnp.zeros((1, H), jnp.float32),
        "g2": jnp.ones((1, H), jnp.float32),
        "be2": jnp.zeros((1, H), jnp.float32),
        "wc": n(ks[6], (1, H)),          # classifier: Linear(H, 1) stored row-major
        "bc": jnp.zeros((1, 1), jnp.float32),
    }


if __name__ == "__main__":
    B, S, H, F, VOCAB = 2, 8, 32, 64, 100
    POS_WEIGHT = 2.0

    key = jax.random.PRNGKey(0)
    kp, kid, klab = jax.random.split(key, 3)

    params = init_params(kp, VOCAB, S, H, F)
    input_ids = jax.random.randint(kid, (B, S), 0, VOCAB, dtype=jnp.int32)
    attention_mask = jnp.ones((B, S), jnp.float32).at[1, S - 2:].set(0.0)
    labels = jax.random.bernoulli(klab, 0.5, (B,)).astype(jnp.float32)

    loss, logits = weighted_binary_classifier_forward(
        params, input_ids, attention_mask, labels, pos_weight=POS_WEIGHT)
    jax.block_until_ready((loss, logits))

    ref_loss, ref_logits = reference_forward(
        params, input_ids, attention_mask, labels, pos_weight=POS_WEIGHT)

    assert logits.shape == (B, 1)
    # Kernel uses bf16 MXU operands (f32 accumulation) + approx EUP reciprocal;
    # the reference is pure f32, so allow a slightly looser tolerance.
    assert jnp.allclose(logits, ref_logits, atol=1e-2, rtol=1e-2)
    assert jnp.allclose(loss, ref_loss, atol=1e-2, rtol=1e-2)

    print("KERNEL_OK")
</pallas_src>

<mosaic_0001>
module attributes {stable_mosaic.version = 11 : i64} {
  func.func @fused_kernel(%arg0: i32, %arg1: memref<1x8x32xf32, #tpu.memory_space<vmem>>, %arg2: memref<1x1x8xf32, #tpu.memory_space<vmem>>, %arg3: memref<3x32x32xbf16, #tpu.memory_space<vmem>>, %arg4: memref<3x1x32xf32, #tpu.memory_space<vmem>>, %arg5: memref<32x32xbf16, #tpu.memory_space<vmem>>, %arg6: memref<1x32xf32, #tpu.memory_space<vmem>>, %arg7: memref<1x32xf32, #tpu.memory_space<vmem>>, %arg8: memref<1x32xf32, #tpu.memory_space<vmem>>, %arg9: memref<32x64xbf16, #tpu.memory_space<vmem>>, %arg10: memref<1x64xf32, #tpu.memory_space<vmem>>, %arg11: memref<64x32xbf16, #tpu.memory_space<vmem>>, %arg12: memref<1x32xf32, #tpu.memory_space<vmem>>, %arg13: memref<1x32xf32, #tpu.memory_space<vmem>>, %arg14: memref<1x32xf32, #tpu.memory_space<vmem>>, %arg15: memref<1x32xf32, #tpu.memory_space<vmem>>, %arg16: memref<1x1xf32, #tpu.memory_space<vmem>>, %arg17: memref<1x1x1xf32, #tpu.memory_space<vmem>>, %arg18: memref<1x1x1xf32, #tpu.memory_space<vmem>>, %arg19: memref<1x1x1xf32, #tpu.memory_space<vmem>>) attributes {dimension_semantics = [#tpu.dimension_semantics<parallel>], iteration_bounds = array<i64: 2>, scalar_prefetch = 0 : i64, scratch_operands = 0 : i64, tpu.core_type = #tpu.core_type<tc>, window_params = [{transform_indices = @transform_0, window_bounds = array<i64: 1, 8, 32>}, {transform_indices = @transform_1, window_bounds = array<i64: 1, 1, 8>}, {pipeline_mode = #tpu.pipeline_mode<synchronous>, transform_indices = @transform_2, window_bounds = array<i64: 3, 32, 32>}, {pipeline_mode = #tpu.pipeline_mode<synchronous>, transform_indices = @transform_3, window_bounds = array<i64: 3, 1, 32>}, {pipeline_mode = #tpu.pipeline_mode<synchronous>, transform_indices = @transform_4, window_bounds = array<i64: 32, 32>}, {pipeline_mode = #tpu.pipeline_mode<synchronous>, transform_indices = @transform_5, window_bounds = array<i64: 1, 32>}, {pipeline_mode = #tpu.pipeline_mode<synchronous>, transform_indices = @transform_6, window_bounds = array<i64: 1, 32>}, {pipeline_mode = #tpu.pipeline_mode<synchronous>, transform_indices = @transform_7, window_bounds = array<i64: 1, 32>}, {pipeline_mode = #tpu.pipeline_mode<synchronous>, transform_indices = @transform_8, window_bounds = array<i64: 32, 64>}, {pipeline_mode = #tpu.pipeline_mode<synchronous>, transform_indices = @transform_9, window_bounds = array<i64: 1, 64>}, {pipeline_mode = #tpu.pipeline_mode<synchronous>, transform_indices = @transform_10, window_bounds = array<i64: 64, 32>}, {pipeline_mode = #tpu.pipeline_mode<synchronous>, transform_indices = @transform_11, window_bounds = array<i64: 1, 32>}, {pipeline_mode = #tpu.pipeline_mode<synchronous>, transform_indices = @transform_12, window_bounds = array<i64: 1, 32>}, {pipeline_mode = #tpu.pipeline_mode<synchronous>, transform_indices = @transform_13, window_bounds = array<i64: 1, 32>}, {pipeline_mode = #tpu.pipeline_mode<synchronous>, transform_indices = @transform_14, window_bounds = array<i64: 1, 32>}, {pipeline_mode = #tpu.pipeline_mode<synchronous>, transform_indices = @transform_15, window_bounds = array<i64: 1, 1>}, {transform_indices = @transform_16, window_bounds = array<i64: 1, 1, 1>}, {transform_indices = @transform_17, window_bounds = array<i64: 1, 1, 1>}, {transform_indices = @transform_18, window_bounds = array<i64: 1, 1, 1>}]} {
    %c0 = arith.constant 0 : index
    %c0_0 = arith.constant 0 : index
    %c0_1 = arith.constant 0 : index
    %0 = vector.load %arg1[%c0, %c0_0, %c0_1] : memref<1x8x32xf32, #tpu.memory_space<vmem>>, vector<1x8x32xf32>
    %1 = vector.shape_cast %0 : vector<1x8x32xf32> to vector<8x32xf32>
    %2 = arith.truncf %1 : vector<8x32xf32> to vector<8x32xbf16>
    %c0_2 = arith.constant 0 : index
    %c0_3 = arith.constant 0 : index
    %c0_4 = arith.constant 0 : index
    %3 = vector.load %arg3[%c0_2, %c0_3, %c0_4] : memref<3x32x32xbf16, #tpu.memory_space<vmem>>, vector<1x32x32xbf16>
    %4 = vector.shape_cast %3 : vector<1x32x32xbf16> to vector<32x32xbf16>
    %cst = arith.constant dense<0.000000e+00> : vector<8x32xf32>
    %5 = tpu.matmul %2, %4, %cst {dimension_numbers = #tpu.dot_dimension_numbers<[1], [0], [0], [1], [0, 0, 1, 1], [], []>} : vector<8x32xbf16>, vector<32x32xbf16>, vector<8x32xf32> -> vector<8x32xf32>
    %c0_5 = arith.constant 0 : index
    %c0_6 = arith.constant 0 : index
    %c0_7 = arith.constant 0 : index
    %6 = vector.load %arg4[%c0_5, %c0_6, %c0_7] : memref<3x1x32xf32, #tpu.memory_space<vmem>>, vector<1x1x32xf32>
    %7 = vector.shape_cast %6 : vector<1x1x32xf32> to vector<1x32xf32>
    %8 = vector.broadcast %7 : vector<1x32xf32> to vector<8x32xf32>
    %9 = arith.addf %5, %8 : vector<8x32xf32>
    %cst_8 = arith.constant 0.176776692 : f32
    %10 = vector.broadcast %cst_8 : f32 to vector<8x32xf32>
    %11 = arith.mulf %9, %10 : vector<8x32xf32>
    %c1 = arith.constant 1 : index
    %c0_9 = arith.constant 0 : index
    %c0_10 = arith.constant 0 : index
    %12 = vector.load %arg3[%c1, %c0_9, %c0_10] : memref<3x32x32xbf16, #tpu.memory_space<vmem>>, vector<1x32x32xbf16>
    %13 = vector.shape_cast %12 : vector<1x32x32xbf16> to vector<32x32xbf16>
    %cst_11 = arith.constant dense<0.000000e+00> : vector<8x32xf32>
    %14 = tpu.matmul %2, %13, %cst_11 {dimension_numbers = #tpu.dot_dimension_numbers<[1], [0], [0], [1], [0, 0, 1, 1], [], []>} : vector<8x32xbf16>, vector<32x32xbf16>, vector<8x32xf32> -> vector<8x32xf32>
    %c1_12 = arith.constant 1 : index
    %c0_13 = arith.constant 0 : index
    %c0_14 = arith.constant 0 : index
    %15 = vector.load %arg4[%c1_12, %c0_13, %c0_14] : memref<3x1x32xf32, #tpu.memory_space<vmem>>, vector<1x1x32xf32>
    %16 = vector.shape_cast %15 : vector<1x1x32xf32> to vector<1x32xf32>
    %17 = vector.broadcast %16 : vector<1x32xf32> to vector<8x32xf32>
    %18 = arith.addf %14, %17 : vector<8x32xf32>
    %c2 = arith.constant 2 : index
    %c0_15 = arith.constant 0 : index
    %c0_16 = arith.constant 0 : index
    %19 = vector.load %arg3[%c2, %c0_15, %c0_16] : memref<3x32x32xbf16, #tpu.memory_space<vmem>>, vector<1x32x32xbf16>
    %20 = vector.shape_cast %19 : vector<1x32x32xbf16> to vector<32x32xbf16>
    %cst_17 = arith.constant dense<0.000000e+00> : vector<8x32xf32>
    %21 = tpu.matmul %2, %20, %cst_17 {dimension_numbers = #tpu.dot_dimension_numbers<[1], [0], [0], [1], [0, 0, 1, 1], [], []>} : vector<8x32xbf16>, vector<32x32xbf16>, vector<8x32xf32> -> vector<8x32xf32>
    %c2_18 = arith.constant 2 : index
    %c0_19 = arith.constant 0 : index
    %c0_20 = arith.constant 0 : index
    %22 = vector.load %arg4[%c2_18, %c0_19, %c0_20] : memref<3x1x32xf32, #tpu.memory_space<vmem>>, vector<1x1x32xf32>
    %23 = vector.shape_cast %22 : vector<1x1x32xf32> to vector<1x32xf32>
    %24 = vector.broadcast %23 : vector<1x32xf32> to vector<8x32xf32>
    %25 = arith.addf %21, %24 : vector<8x32xf32>
    %26 = arith.truncf %11 : vector<8x32xf32> to vector<8x32xbf16>
    %27 = arith.truncf %18 : vector<8x32xf32> to vector<8x32xbf16>
    %cst_21 = arith.constant dense<0.000000e+00> : vector<8x8xf32>
    %28 = tpu.matmul %26, %27, %cst_21 {dimension_numbers = #tpu.dot_dimension_numbers<[1], [1], [0], [0], [0, 0, 1, 0], [], []>} : vector<8x32xbf16>, vector<8x32xbf16>, vector<8x8xf32> -> vector<8x8xf32>
    %c0_22 = arith.constant 0 : index
    %c0_23 = arith.constant 0 : index
    %c0_24 = arith.constant 0 : index
    %29 = vector.load %arg2[%c0_22, %c0_23, %c0_24] : memref<1x1x8xf32, #tpu.memory_space<vmem>>, vector<1x1x8xf32>
    %30 = vector.shape_cast %29 : vector<1x1x8xf32> to vector<1x8xf32>
    %cst_25 = arith.constant 5.000000e-01 : f32
    %31 = vector.broadcast %cst_25 : f32 to vector<1x8xf32>
    %32 = arith.cmpf ogt, %30, %31 : vector<1x8xf32>
    %cst_26 = arith.constant 0.000000e+00 : f32
    %cst_27 = arith.constant -1.000000e+09 : f32
    %33 = vector.broadcast %cst_26 : f32 to vector<1x8xf32>
    %34 = vector.broadcast %cst_27 : f32 to vector<1x8xf32>
    %35 = arith.select %32, %33, %34 : vector<1x8xi1>, vector<1x8xf32>
    %36 = vector.broadcast %35 : vector<1x8xf32> to vector<8x8xf32>
    %37 = arith.addf %28, %36 : vector<8x8xf32>
    %cst_28 = arith.constant dense<0xFF800000> : vector<8xf32>
    %38 = vector.multi_reduction <maximumf>, %37, %cst_28 [1] : vector<8x8xf32> to vector<8xf32>
    %39 = vector.shape_cast %38 : vector<8xf32> to vector<8x1xf32>
    %40 = vector.broadcast %39 : vector<8x1xf32> to vector<8x8xf32>
    %41 = arith.subf %37, %40 : vector<8x8xf32>
    %42 = math.exp %41 : vector<8x8xf32>
    %cst_29 = arith.constant dense<0.000000e+00> : vector<8xf32>
    %43 = vector.multi_reduction <add>, %42, %cst_29 [1] : vector<8x8xf32> to vector<8xf32>
    %44 = vector.shape_cast %43 : vector<8xf32> to vector<8x1xf32>
    %45 = tpu.reciprocal %44 {approx = true} : vector<8x1xf32> -> vector<8x1xf32>
    %46 = vector.broadcast %45 : vector<8x1xf32> to vector<8x8xf32>
    %47 = arith.mulf %42, %46 : vector<8x8xf32>
    %48 = arith.truncf %47 : vector<8x8xf32> to vector<8x8xbf16>
    %49 = arith.truncf %25 : vector<8x32xf32> to vector<8x32xbf16>
    %cst_30 = arith.constant dense<0.000000e+00> : vector<8x32xf32>
    %50 = tpu.matmul %48, %49, %cst_30 {dimension_numbers = #tpu.dot_dimension_numbers<[1], [0], [0], [1], [0, 0, 1, 1], [], []>} : vector<8x8xbf16>, vector<8x32xbf16>, vector<8x32xf32> -> vector<8x32xf32>
    %51 = arith.truncf %50 : vector<8x32xf32> to vector<8x32xbf16>
    %c0_31 = arith.constant 0 : index
    %c0_32 = arith.constant 0 : index
    %52 = vector.load %arg5[%c0_31, %c0_32] : memref<32x32xbf16, #tpu.memory_space<vmem>>, vector<32x32xbf16>
    %cst_33 = arith.constant dense<0.000000e+00> : vector<8x32xf32>
    %53 = tpu.matmul %51, %52, %cst_33 {dimension_numbers = #tpu.dot_dimension_numbers<[1], [0], [0], [1], [0, 0, 1, 1], [], []>} : vector<8x32xbf16>, vector<32x32xbf16>, vector<8x32xf32> -> vector<8x32xf32>
    %c0_34 = arith.constant 0 : index
    %c0_35 = arith.constant 0 : index
    %54 = vector.load %arg6[%c0_34, %c0_35] : memref<1x32xf32, #tpu.memory_space<vmem>>, vector<1x32xf32>
    %55 = vector.broadcast %54 : vector<1x32xf32> to vector<8x32xf32>
    %56 = arith.addf %53, %55 : vector<8x32xf32>
    %57 = arith.addf %1, %56 : vector<8x32xf32>
    %c0_36 = arith.constant 0 : index
    %c0_37 = arith.constant 0 : index
    %58 = vector.load %arg7[%c0_36, %c0_37] : memref<1x32xf32, #tpu.memory_space<vmem>>, vector<1x32xf32>
    %c0_38 = arith.constant 0 : index
    %c0_39 = arith.constant 0 : index
    %59 = vector.load %arg8[%c0_38, %c0_39] : memref<1x32xf32, #tpu.memory_space<vmem>>, vector<1x32xf32>
    %cst_40 = arith.constant dense<0.000000e+00> : vector<8xf32>
    %60 = vector.multi_reduction <add>, %57, %cst_40 [1] : vector<8x32xf32> to vector<8xf32>
    %61 = vector.shape_cast %60 : vector<8xf32> to vector<8x1xf32>
    %cst_41 = arith.constant 3.200000e+01 : f32
    %62 = vector.broadcast %cst_41 : f32 to vector<8x1xf32>
    %63 = arith.divf %61, %62 : vector<8x1xf32>
    %64 = vector.broadcast %63 : vector<8x1xf32> to vector<8x32xf32>
    %65 = arith.subf %57, %64 : vector<8x32xf32>
    %66 = arith.mulf %65, %65 : vector<8x32xf32>
    %cst_42 = arith.constant dense<0.000000e+00> : vector<8xf32>
    %67 = vector.multi_reduction <add>, %66, %cst_42 [1] : vector<8x32xf32> to vector<8xf32>
    %68 = vector.shape_cast %67 : vector<8xf32> to vector<8x1xf32>
    %cst_43 = arith.constant 3.200000e+01 : f32
    %69 = vector.broadcast %cst_43 : f32 to vector<8x1xf32>
    %70 = arith.divf %68, %69 : vector<8x1xf32>
    %71 = vector.broadcast %63 : vector<8x1xf32> to vector<8x32xf32>
    %72 = arith.subf %57, %71 : vector<8x32xf32>
    %cst_44 = arith.constant 9.99999996E-13 : f32
    %73 = vector.broadcast %cst_44 : f32 to vector<8x1xf32>
    %74 = arith.addf %70, %73 : vector<8x1xf32>
    %75 = math.rsqrt %74 : vector<8x1xf32>
    %76 = vector.broadcast %75 : vector<8x1xf32> to vector<8x32xf32>
    %77 = arith.mulf %72, %76 : vector<8x32xf32>
    %78 = vector.broadcast %58 : vector<1x32xf32> to vector<8x32xf32>
    %79 = arith.mulf %77, %78 : vector<8x32xf32>
    %80 = vector.broadcast %59 : vector<1x32xf32> to vector<8x32xf32>
    %81 = arith.addf %79, %80 : vector<8x32xf32>
    %82 = arith.truncf %81 : vector<8x32xf32> to vector<8x32xbf16>
    %c0_45 = arith.constant 0 : index
    %c0_46 = arith.constant 0 : index
    %83 = vector.load %arg9[%c0_45, %c0_46] : memref<32x64xbf16, #tpu.memory_space<vmem>>, vector<32x64xbf16>
    %cst_47 = arith.constant dense<0.000000e+00> : vector<8x64xf32>
    %84 = tpu.matmul %82, %83, %cst_47 {dimension_numbers = #tpu.dot_dimension_numbers<[1], [0], [0], [1], [0, 0, 1, 1], [], []>} : vector<8x32xbf16>, vector<32x64xbf16>, vector<8x64xf32> -> vector<8x64xf32>
    %c0_48 = arith.constant 0 : index
    %c0_49 = arith.constant 0 : index
    %85 = vector.load %arg10[%c0_48, %c0_49] : memref<1x64xf32, #tpu.memory_space<vmem>>, vector<1x64xf32>
    %86 = vector.broadcast %85 : vector<1x64xf32> to vector<8x64xf32>
    %87 = arith.addf %84, %86 : vector<8x64xf32>
    %cst_50 = arith.constant 5.000000e-01 : f32
    %88 = vector.broadcast %cst_50 : f32 to vector<8x64xf32>
    %89 = arith.mulf %88, %87 : vector<8x64xf32>
    %cst_51 = arith.constant 4.471500e-02 : f32
    %90 = vector.broadcast %cst_51 : f32 to vector<8x64xf32>
    %91 = arith.mulf %90, %87 : vector<8x64xf32>
    %92 = arith.mulf %91, %87 : vector<8x64xf32>
    %93 = arith.mulf %92, %87 : vector<8x64xf32>
    %94 = arith.addf %87, %93 : vector<8x64xf32>
    %cst_52 = arith.constant 0.797884583 : f32
    %95 = vector.broadcast %cst_52 : f32 to vector<8x64xf32>
    %96 = arith.mulf %95, %94 : vector<8x64xf32>
    %97 = math.tanh %96 : vector<8x64xf32>
    %cst_53 = arith.constant 1.000000e+00 : f32
    %98 = vector.broadcast %cst_53 : f32 to vector<8x64xf32>
    %99 = arith.addf %98, %97 : vector<8x64xf32>
    %100 = arith.mulf %89, %99 : vector<8x64xf32>
    %101 = arith.truncf %100 : vector<8x64xf32> to vector<8x64xbf16>
    %c0_54 = arith.constant 0 : index
    %c0_55 = arith.constant 0 : index
    %102 = vector.load %arg11[%c0_54, %c0_55] : memref<64x32xbf16, #tpu.memory_space<vmem>>, vector<64x32xbf16>
    %cst_56 = arith.constant dense<0.000000e+00> : vector<8x32xf32>
    %103 = tpu.matmul %101, %102, %cst_56 {dimension_numbers = #tpu.dot_dimension_numbers<[1], [0], [0], [1], [0, 0, 1, 1], [], []>} : vector<8x64xbf16>, vector<64x32xbf16>, vector<8x32xf32> -> vector<8x32xf32>
    %c0_57 = arith.constant 0 : index
    %c0_58 = arith.constant 0 : index
    %104 = vector.load %arg12[%c0_57, %c0_58] : memref<1x32xf32, #tpu.memory_space<vmem>>, vector<1x32xf32>
    %105 = vector.broadcast %104 : vector<1x32xf32> to vector<8x32xf32>
    %106 = arith.addf %103, %105 : vector<8x32xf32>
    %107 = arith.addf %81, %106 : vector<8x32xf32>
    %c0_59 = arith.constant 0 : index
    %c0_60 = arith.constant 0 : index
    %108 = vector.load %arg13[%c0_59, %c0_60] : memref<1x32xf32, #tpu.memory_space<vmem>>, vector<1x32xf32>
    %c0_61 = arith.constant 0 : index
    %c0_62 = arith.constant 0 : index
    %109 = vector.load %arg14[%c0_61, %c0_62] : memref<1x32xf32, #tpu.memory_space<vmem>>, vector<1x32xf32>
    %cst_63 = arith.constant dense<0.000000e+00> : vector<8xf32>
    %110 = vector.multi_reduction <add>, %107, %cst_63 [1] : vector<8x32xf32> to vector<8xf32>
    %111 = vector.shape_cast %110 : vector<8xf32> to vector<8x1xf32>
    %cst_64 = arith.constant 3.200000e+01 : f32
    %112 = vector.broadcast %cst_64 : f32 to vector<8x1xf32>
    %113 = arith.divf %111, %112 : vector<8x1xf32>
    %114 = vector.broadcast %113 : vector<8x1xf32> to vector<8x32xf32>
    %115 = arith.subf %107, %114 : vector<8x32xf32>
    %116 = arith.mulf %115, %115 : vector<8x32xf32>
    %cst_65 = arith.constant dense<0.000000e+00> : vector<8xf32>
    %117 = vector.multi_reduction <add>, %116, %cst_65 [1] : vector<8x32xf32> to vector<8xf32>
    %118 = vector.shape_cast %117 : vector<8xf32> to vector<8x1xf32>
    %cst_66 = arith.constant 3.200000e+01 : f32
    %119 = vector.broadcast %cst_66 : f32 to vector<8x1xf32>
    %120 = arith.divf %118, %119 : vector<8x1xf32>
    %121 = vector.broadcast %113 : vector<8x1xf32> to vector<8x32xf32>
    %122 = arith.subf %107, %121 : vector<8x32xf32>
    %cst_67 = arith.constant 9.99999996E-13 : f32
    %123 = vector.broadcast %cst_67 : f32 to vector<8x1xf32>
    %124 = arith.addf %120, %123 : vector<8x1xf32>
    %125 = math.rsqrt %124 : vector<8x1xf32>
    %126 = vector.broadcast %125 : vector<8x1xf32> to vector<8x32xf32>
    %127 = arith.mulf %122, %126 : vector<8x32xf32>
    %128 = vector.broadcast %108 : vector<1x32xf32> to vector<8x32xf32>
    %129 = arith.mulf %127, %128 : vector<8x32xf32>
    %130 = vector.broadcast %109 : vector<1x32xf32> to vector<8x32xf32>
    %131 = arith.addf %129, %130 : vector<8x32xf32>
    %132 = vector.extract_strided_slice %131 {offsets = [0, 0], sizes = [1, 32], strides = [1, 1]} : vector<8x32xf32> to vector<1x32xf32>
    %c0_68 = arith.constant 0 : index
    %c0_69 = arith.constant 0 : index
    %133 = vector.load %arg15[%c0_68, %c0_69] : memref<1x32xf32, #tpu.memory_space<vmem>>, vector<1x32xf32>
    %134 = arith.mulf %132, %133 : vector<1x32xf32>
    %cst_70 = arith.constant dense<0.000000e+00> : vector<1xf32>
    %135 = vector.multi_reduction <add>, %134, %cst_70 [1] : vector<1x32xf32> to vector<1xf32>
    %136 = vector.shape_cast %135 : vector<1xf32> to vector<1x1xf32>
    %c0_71 = arith.constant 0 : index
    %c0_72 = arith.constant 0 : index
    %137 = vector.load %arg16[%c0_71, %c0_72] : memref<1x1xf32, #tpu.memory_space<vmem>>, vector<1x1xf32>
    %138 = arith.addf %136, %137 : vector<1x1xf32>
    %c0_73 = arith.constant 0 : index
    %c0_74 = arith.constant 0 : index
    %c0_75 = arith.constant 0 : index
    %139 = vector.load %arg18[%c0_73, %c0_74, %c0_75] : memref<1x1x1xf32, #tpu.memory_space<vmem>>, vector<1x1x1xf32>
    %140 = vector.shape_cast %139 : vector<1x1x1xf32> to vector<1x1xf32>
    %141 = vector.shape_cast %138 : vector<1x1xf32> to vector<1x1x1xf32>
    tpu.vector_store %arg18[%c0_73, %c0_74, %c0_75], %141 {strides = array<i32>} : memref<1x1x1xf32, #tpu.memory_space<vmem>>, vector<1x1x1xf32>,
    %c0_76 = arith.constant 0 : index
    %c0_77 = arith.constant 0 : index
    %c0_78 = arith.constant 0 : index
    %142 = vector.load %arg17[%c0_76, %c0_77, %c0_78] : memref<1x1x1xf32, #tpu.memory_space<vmem>>, vector<1x1x1xf32>
    %143 = vector.shape_cast %142 : vector<1x1x1xf32> to vector<1x1xf32>
    %cst_79 = arith.constant 0.000000e+00 : f32
    %144 = vector.broadcast %cst_79 : f32 to vector<1x1xf32>
    %145 = arith.subf %144, %138 : vector<1x1xf32>
    %cst_80 = arith.constant 0.000000e+00 : f32
    %146 = vector.broadcast %cst_80 : f32 to vector<1x1xf32>
    %147 = arith.maximumf %145, %146 : vector<1x1xf32>
    %148 = math.absf %138 : vector<1x1xf32>
    %cst_81 = arith.constant 0.000000e+00 : f32
    %149 = vector.broadcast %cst_81 : f32 to vector<1x1xf32>
    %150 = arith.subf %149, %148 : vector<1x1xf32>
    %151 = math.exp %150 : vector<1x1xf32>
    %152 = math.log1p %151 : vector<1x1xf32>
    %153 = arith.addf %147, %152 : vector<1x1xf32>
    %cst_82 = arith.constant 1.000000e+00 : f32
    %154 = vector.broadcast %cst_82 : f32 to vector<1x1xf32>
    %155 = arith.subf %154, %143 : vector<1x1xf32>
    %156 = arith.mulf %155, %138 : vector<1x1xf32>
    %cst_83 = arith.constant 1.000000e+00 : f32
    %157 = vector.broadcast %cst_83 : f32 to vector<1x1xf32>
    %158 = arith.mulf %157, %143 : vector<1x1xf32>
    %cst_84 = arith.constant 1.000000e+00 : f32
    %159 = vector.broadcast %cst_84 : f32 to vector<1x1xf32>
    %160 = arith.addf %159, %158 : vector<1x1xf32>
    %161 = arith.mulf %160, %153 : vector<1x1xf32>
    %162 = arith.addf %156, %161 : vector<1x1xf32>
    %c0_85 = arith.constant 0 : index
    %c0_86 = arith.constant 0 : index
    %c0_87 = arith.constant 0 : index
    %163 = vector.load %arg19[%c0_85, %c0_86, %c0_87] : memref<1x1x1xf32, #tpu.memory_space<vmem>>, vector<1x1x1xf32>
    %164 = vector.shape_cast %163 : vector<1x1x1xf32> to vector<1x1xf32>
    %165 = vector.shape_cast %162 : vector<1x1xf32> to vector<1x1x1xf32>
    tpu.vector_store %arg19[%c0_85, %c0_86, %c0_87], %165 {strides = array<i32>} : memref<1x1x1xf32, #tpu.memory_space<vmem>>, vector<1x1x1xf32>,
    return
  }
  func.func @transform_0(%arg0: i32) -> (i32, i32, i32) {
    %c0_i32 = arith.constant 0 : i32
    %c0_i32_0 = arith.constant 0 : i32
    %c0_i32_1 = arith.constant 0 : i32
    return %arg0, %c0_i32, %c0_i32_0 : i32, i32, i32
  }
  func.func @transform_1(%arg0: i32) -> (i32, i32, i32) {
    %c0_i32 = arith.constant 0 : i32
    %c0_i32_0 = arith.constant 0 : i32
    %c0_i32_1 = arith.constant 0 : i32
    return %arg0, %c0_i32, %c0_i32_0 : i32, i32, i32
  }
  func.func @transform_2(%arg0: i32) -> (i32, i32, i32) {
    %c0_i32 = arith.constant 0 : i32
    %c0_i32_0 = arith.constant 0 : i32
    %c0_i32_1 = arith.constant 0 : i32
    %c0_i32_2 = arith.constant 0 : i32
    return %c0_i32, %c0_i32_0, %c0_i32_1 : i32, i32, i32
  }
  func.func @transform_3(%arg0: i32) -> (i32, i32, i32) {
    %c0_i32 = arith.constant 0 : i32
    %c0_i32_0 = arith.constant 0 : i32
    %c0_i32_1 = arith.constant 0 : i32
    %c0_i32_2 = arith.constant 0 : i32
    return %c0_i32, %c0_i32_0, %c0_i32_1 : i32, i32, i32
  }
  func.func @transform_4(%arg0: i32) -> (i32, i32) {
    %c0_i32 = arith.constant 0 : i32
    %c0_i32_0 = arith.constant 0 : i32
    %c0_i32_1 = arith.constant 0 : i32
    return %c0_i32, %c0_i32_0 : i32, i32
  }
  func.func @transform_5(%arg0: i32) -> (i32, i32) {
    %c0_i32 = arith.constant 0 : i32
    %c0_i32_0 = arith.constant 0 : i32
    %c0_i32_1 = arith.constant 0 : i32
    return %c0_i32, %c0_i32_0 : i32, i32
  }
  func.func @transform_6(%arg0: i32) -> (i32, i32) {
    %c0_i32 = arith.constant 0 : i32
    %c0_i32_0 = arith.constant 0 : i32
    %c0_i32_1 = arith.constant 0 : i32
    return %c0_i32, %c0_i32_0 : i32, i32
  }
  func.func @transform_7(%arg0: i32) -> (i32, i32) {
    %c0_i32 = arith.constant 0 : i32
    %c0_i32_0 = arith.constant 0 : i32
    %c0_i32_1 = arith.constant 0 : i32
    return %c0_i32, %c0_i32_0 : i32, i32
  }
  func.func @transform_8(%arg0: i32) -> (i32, i32) {
    %c0_i32 = arith.constant 0 : i32
    %c0_i32_0 = arith.constant 0 : i32
    %c0_i32_1 = arith.constant 0 : i32
    return %c0_i32, %c0_i32_0 : i32, i32
  }
  func.func @transform_9(%arg0: i32) -> (i32, i32) {
    %c0_i32 = arith.constant 0 : i32
    %c0_i32_0 = arith.constant 0 : i32
    %c0_i32_1 = arith.constant 0 : i32
    return %c0_i32, %c0_i32_0 : i32, i32
  }
  func.func @transform_10(%arg0: i32) -> (i32, i32) {
    %c0_i32 = arith.constant 0 : i32
    %c0_i32_0 = arith.constant 0 : i32
    %c0_i32_1 = arith.constant 0 : i32
    return %c0_i32, %c0_i32_0 : i32, i32
  }
  func.func @transform_11(%arg0: i32) -> (i32, i32) {
    %c0_i32 = arith.constant 0 : i32
    %c0_i32_0 = arith.constant 0 : i32
    %c0_i32_1 = arith.constant 0 : i32
    return %c0_i32, %c0_i32_0 : i32, i32
  }
  func.func @transform_12(%arg0: i32) -> (i32, i32) {
    %c0_i32 = arith.constant 0 : i32
    %c0_i32_0 = arith.constant 0 : i32
    %c0_i32_1 = arith.constant 0 : i32
    return %c0_i32, %c0_i32_0 : i32, i32
  }
  func.func @transform_13(%arg0: i32) -> (i32, i32) {
    %c0_i32 = arith.constant 0 : i32
    %c0_i32_0 = arith.constant 0 : i32
    %c0_i32_1 = arith.constant 0 : i32
    return %c0_i32, %c0_i32_0 : i32, i32
  }
  func.func @transform_14(%arg0: i32) -> (i32, i32) {
    %c0_i32 = arith.constant 0 : i32
    %c0_i32_0 = arith.constant 0 : i32
    %c0_i32_1 = arith.constant 0 : i32
    return %c0_i32, %c0_i32_0 : i32, i32
  }
  func.func @transform_15(%arg0: i32) -> (i32, i32) {
    %c0_i32 = arith.constant 0 : i32
    %c0_i32_0 = arith.constant 0 : i32
    %c0_i32_1 = arith.constant 0 : i32
    return %c0_i32, %c0_i32_0 : i32, i32
  }
  func.func @transform_16(%arg0: i32) -> (i32, i32, i32) {
    %c0_i32 = arith.constant 0 : i32
    %c0_i32_0 = arith.constant 0 : i32
    %c0_i32_1 = arith.constant 0 : i32
    return %arg0, %c0_i32, %c0_i32_0 : i32, i32, i32
  }
  func.func @transform_17(%arg0: i32) -> (i32, i32, i32) {
    %c0_i32 = arith.constant 0 : i32
    %c0_i32_0 = arith.constant 0 : i32
    %c0_i32_1 = arith.constant 0 : i32
    return %arg0, %c0_i32, %c0_i32_0 : i32, i32, i32
  }
  func.func @transform_18(%arg0: i32) -> (i32, i32, i32) {
    %c0_i32 = arith.constant 0 : i32
    %c0_i32_0 = arith.constant 0 : i32
    %c0_i32_1 = arith.constant 0 : i32
    return %arg0, %c0_i32, %c0_i32_0 : i32, i32, i32
  }
}

</mosaic_0001>

<bundles_post_ra>
// kernel: weighted_binary_classifier_forward.1
= control target key start
LH: loop header
LB: loop body
LE: loop exit
PB: predicated region body
PF: predicated region fallthrough
CT: control target
= control target key end

     0   :  { %s1624_s29 = smov 0   ;;  %s1785_s0 = inlined_call_operand.vmem [shape: f32[2,8,32], index: 0, kind: input, shape index: {}]   ;;  %s1786_s1 = inlined_call_operand.vmem [shape: f32[2,1,8], index: 1, kind: input, shape index: {}]   ;;  %s1787_s2 = inlined_call_operand.vmem [shape: bf16[3,32,32], index: 2, kind: input, shape index: {}]   ;;  %s1788_s3 = inlined_call_operand.vmem [shape: f32[3,1,32], index: 3, kind: input, shape index: {}]   ;;  %s1789_s4 = inlined_call_operand.vmem [shape: bf16[32,32], index: 4, kind: input, shape index: {}]   ;;  %s1790_s5 = inlined_call_operand.vmem [shape: f32[1,32], index: 5, kind: input, shape index: {}]   ;;  %s1791_s6 = inlined_call_operand.vmem [shape: f32[1,32], index: 6, kind: input, shape index: {}]   ;;  %s1792_s7 = inlined_call_operand.vmem [shape: f32[1,32], index: 7, kind: input, shape index: {}]   ;;  %s1793_s8 = inlined_call_operand.vmem [shape: bf16[32,64], index: 8, kind: input, shape index: {}]   ;;  %s1794_s9 = inlined_call_operand.vmem [shape: f32[1,64], index: 9, kind: input, shape index: {}]   ;;  %s1795_s10 = inlined_call_operand.vmem [shape: bf16[64,32], index: 10, kind: input, shape index: {}]   ;;  %s1796_s11 = inlined_call_operand.vmem [shape: f32[1,32], index: 11, kind: input, shape index: {}]   ;;  %s1797_s12 = inlined_call_operand.vmem [shape: f32[1,32], index: 12, kind: input, shape index: {}]   ;;  %s1798_s13 = inlined_call_operand.vmem [shape: f32[1,32], index: 13, kind: input, shape index: {}]   ;;  %s1799_s14 = inlined_call_operand.vmem [shape: f32[1,32], index: 14, kind: input, shape index: {}]   ;;  %s1800_s15 = inlined_call_operand.<no memory space> [shape: f32[1,1], index: 15, kind: input, shape index: {}]   ;;  %s1801_s16 = inlined_call_operand.vmem [shape: f32[2,1,1], index: 16, kind: input, shape index: {}]   ;;  %s1802_s17 = inlined_call_operand.vmem [shape: f32[2,1,1], index: 17, kind: output, shape index: {0}]   ;;  %s1803_s18 = inlined_call_operand.vmem [shape: f32[2,1,1], index: 18, kind: output, shape index: {1}]  }
   0x1   :  { %1805 = sst [smem:[#allocation3_spill]] %s1785_s0  ;;  %v24_v0 = vstv %s1800_s15 }
   0x2   :  { %1806 = sst [smem:[#allocation4_spill]] %s1786_s1  ;;  %25 = vst [vmem:[#allocation2] sm:$0x1] %v24_v0 }
   0x3   :  { %1807 = sst [smem:[#allocation5_spill]] %s1787_s2 }
   0x4 LB: > { %s1338_s30 = sadd.s32 4294967295, %s1521_s29   ;;  %p1342_p0 = scmp.ge.s32.totalorder %s1521_s29, 1  ;;  %s1521_s29 = sphi %s1624_s29, %s31_s29  }
   0x5   : > { %p532_p1 = scmp.lt.s32.totalorder %s1521_s29, 3 }
   0x7   : > { %p533_p2 = pnand %p1342_p0, %p532_p1 }
   0x8   : > { %s1808_s1 = sld [smem:[#allocation5_spill]] (!%p533_p2)  ;;  %v1523_v2 = vmov (!%p533_p2), 0.0   ;;  %vm1524_vm0 = vmmov (!%p533_p2), 0   ;;  %p592_p3 = scmp.lt.s32.totalorder (!%p533_p2), %s1338_s30, 1  ;;  %vm634_vm1 = vcmask (!%p533_p2), 261120   ;;  %v815_v26 = vlaneseq (!%p533_p2)  ;;  %v1493_v52 = vld [vmem:[%s1789_s4] sm:$0xff] (!%p533_p2)  }
   0x9   : > { %536 = sbr.rel (%p533_p2) target bundleno = 2478 (0x9ae), region = 88  ;;  %1420 = vmatprep.subr.bf16.mxu1 (!%p533_p2), %v1523_v2  ;;  %1412 = vmatprep.subr.bf16.mxu0 (!%p533_p2), %v1523_v2  ;;  %s1809_s27 = sld [smem:[#allocation3_spill]] (!%p533_p2)  ;;  %v1353_v8 = vld [vmem:[%s1788_s3 + $0x1] ss:$0 sm:$0xff] (!%p533_p2)  ;;  %v1344_v9 = vld [vmem:[%s1788_s3] ss:$0 sm:$0xff] (!%p533_p2) }
   0xa   : > { %1424 = vmatprep.mubr.msk.bf16.mxu1 (!%p533_p2), %vm1524_vm0, %v1523_v2  ;;  %1416 = vmatprep.mubr.msk.bf16.mxu0 (!%p533_p2), %vm1524_vm0, %v1523_v2  ;;  %s1810_s26 = sld [smem:[#allocation4_spill]] (!%p533_p2)  ;;  %v816_v28 = vshrl.u32 (!%p533_p2), %v815_v26, 7  ;;  %v1525_v30 = vmov (!%p533_p2), -1e+09   ;;  %vm866_vm3 = vcmask (!%p533_p2), 64512   ;;  %vm883_vm4 = vcmask (!%p533_p2), 1043456  }
   0xb   : > { %v1362_v47 = vld [vmem:[%s1788_s3 + $0x2] ss:$0 sm:$0xff] (!%p533_p2)  ;;  %v1494_v57 = vld [vmem:[%s1789_s4 + $0x8] sm:$0xff] (!%p533_p2)   ;;  %v1368_v63 = vld [vmem:[%s1790_s5] ss:$0 sm:$0xff] (!%p533_p2)  ;;  %vm1141_vm5 = vcmask (!%p533_p2), 523264  }
   0xc   : > { %v817_v29 = vsub.s32 (!%p533_p2), 0, %v816_v28  ;;  %v1498_v26 = vld [vmem:[%s1795_s10 + $0x8] sm:$0xff] (!%p533_p2)   ;;  %v1500_v28 = vld [vmem:[%s1795_s10 + $0x18] sm:$0xff] (!%p533_p2)   ;;  %vm1217_vm6 = vcmask (!%p533_p2), 253952   ;;  %vm1223_vm7 = vcmask (!%p533_p2), 0  }
   0xe   : > { %v1487_v1 = vld [vmem:[%s1808_s1 + $0x10] sm:$0xff] (!%p533_p2)   ;;  %v1488_v3 = vld [vmem:[%s1808_s1] sm:$0xff] (!%p533_p2)   ;;  %v1489_v4 = vld [vmem:[%s1808_s1 + $0x18] sm:$0xff] (!%p533_p2)  }
   0xf   : > { %1421 = vmatpush3.bf16.msra.mxu1 (!%p533_p2), %v1487_v1  ;;  %1413 = vmatpush3.bf16.msra.mxu0 (!%p533_p2), %v1488_v3  ;;  %v1490_v5 = vld [vmem:[%s1808_s1 + $0x8] sm:$0xff] (!%p533_p2)   ;;  %v1491_v24 = vld [vmem:[%s1808_s1 + $0x20] sm:$0xff] (!%p533_p2)  }
  0x10   : > { %1422 = vmatprep.subr.bf16.mxu1 %v1523_v2  ;;  %1414 = vmatprep.subr.bf16.mxu0 %v1523_v2  ;;  %s1812_s30 = smov (!%p592_p3, %s1338_s30), 1  ;;  %v1492_v25 = vld [vmem:[%s1808_s1 + $0x28] sm:$0xff]  }
  0x11   : > { %s1343_s24 = sshll.u32 %s1812_s30, 3  ;;  %s604_s25 = scalar_lea.vmem %s1802_s17, %s1812_s30 }
  0x12   : > { %s595_s28 = scalar_lea.vmem %s1809_s27, %s1343_s24  ;;  %s598_s27 = scalar_lea.vmem %s1810_s26, %s1812_s30 }
  0x13   : > { %1423 = vmatpush3.bf16.msra.mxu1 %v1489_v4  ;;  %1415 = vmatpush3.bf16.msra.mxu0 %v1490_v5  ;;  %v1659_v6 = vld [vmem:[%s595_s28] sm:$0xff]  ;;  %s601_s28 = scalar_lea.vmem %s1801_s16, %s1812_s30  ;;  %s607_s15 = scalar_lea.vmem %s1803_s18, %s1812_s30 }
  0x14   : > { %1436 = vmatprep.subr.bf16.mxu1 %v1523_v2  ;;  %1428 = vmatprep.subr.bf16.mxu0 %v1523_v2  ;;  %v610_v7 = vpack.c.bf16 %v1659_v6, %v1659_v6  ;;  %v811_v27 = vld [vmem:[%s598_s27] sm:$0x1] }
  0x15   : > { %vm812_vm2 = vcmp.gt.f32.partialorder %v811_v27, 0.5  ;;  %v1499_v27 = vld [vmem:[%s1795_s10 + $0x10] sm:$0xff]  }
  0x16   : > { %1425 = vmatmul.mubr.msk.bf16.vlgmr.msra.gmra.mrb[0].mxu1 %vm634_vm1, %v610_v7  ;;  %1417 = vmatmul.mubr.msk.bf16.vlgmr.msra.gmra.mrb[0].mxu0 %vm634_vm1, %v610_v7  ;;  %v813_v31 = vsel %vm812_vm2, 0.0, %v1525_v30 }
  0x17   : > { %1438 = vmatprep.mubr.msk.bf16.mxu1 %vm1524_vm0, %v1523_v2  ;;  %1432 = vmatprep.mubr.msk.bf16.mxu0 %vm1524_vm0, %v1523_v2  ;;  %v818_v32 = vrot.slane %v813_v31, %v817_v29  ;;  %v1374_v29 = vld [vmem:[%s1794_s9] ss:$0 sm:$0xff] }
  0x18   : > { %1429 = vmatpush3.bf16.msra.mxu0 %v1491_v24 }
  0x19   : > { %1430 = vmatprep.subr.bf16.mxu0 %v1523_v2 }
  0x1c   : > { %1431 = vmatpush3.bf16.msra.mxu0 %v1492_v25  ;;  %v1497_v25 = vld [vmem:[%s1795_s10] sm:$0xff]  }
  0x1d   : > { %1442 = vmatprep.subr.bf16.mxu0 %v1523_v2 }
  0x1f   : > { %1433 = vmatmul.mubr.msk.bf16.vlgmr.msra.gmra.mrb[4].mxu0 %vm634_vm1, %v610_v7 }
  0x20   : > { %1444 = vmatprep.mubr.msk.bf16.mxu0 %vm1524_vm0, %v1523_v2 }
  0xe9   : > { %v738_v10 = vpop.f32.mrb[0].mxu1  ;;  %v672_v11 = vpop.f32.mrb[0].mxu0 }
  0xea   : > { %v739_v12 = vadd.f32 %v1353_v8, %v738_v10  ;;  %v1426_v13 = vpop.f32.mrb[1].mxu1  ;;  %v673_v14 = vadd.f32 %v1344_v9, %v672_v11  ;;  %v1418_v15 = vpop.f32.mrb[1].mxu0 }
  0xeb   : > { %v741_v16 = vpop.f32.mrb[2].mxu1  ;;  %v675_v17 = vpop.f32.mrb[2].mxu0 }
  0xec   : > { %v810_v18 = vpack.c.bf16 %v739_v12, %v739_v12  ;;  %v1427_v19 = vpop.f32.mrb[3].mxu1  ;;  %v1419_v20 = vpop.f32.mrb[3].mxu0  ;;  %v678_v22 = vmul.f32 0.17677669, %v673_v14  ;;  %v1495_v14 = vld [vmem:[%s1793_s8] sm:$0xff]  }
  0xed   : > { %v1372_v19 = vld [vmem:[%s1791_s6] ss:$0 sm:$0xff] }
  0xee   : > { %v824_v21 = vsel %vm634_vm1, %v810_v18, 0  ;;  %v809_v23 = vpack.c.bf16 %v678_v22, %v678_v22 }
  0xef   : > { %1437 = vmatpush3.bf16.xpose.msra.mxu1 %v824_v21  ;;  %v1373_v21 = vld [vmem:[%s1792_s7] ss:$0 sm:$0xff] }
  0xf0   : > { %1448 = vmatprep.subr.bf16.mxu1 %v1523_v2 }
  0xf2   : > { %v803_v44 = vpop.f32.mrb[4].mxu0 }
  0xf3   : > { %v1434_v45 = vpop.f32.mrb[5].mxu0  ;;  %v804_v49 = vadd.f32 %v1362_v47, %v803_v44  ;;  %v1378_v44 = vld [vmem:[%s1796_s11] ss:$0 sm:$0xff] }
  0xf4   : > { %v806_v46 = vpop.f32.mrb[6].mxu0 }
  0xf5   : > { %v1435_v48 = vpop.f32.mrb[7].mxu0  ;;  %v879_v50 = vpack.c.bf16 %v804_v49, %v804_v49 }
  0xf6   : > { %1439 = vmatmul.mubr.msk.bf16.vlgmr.msra.gmra.mrb[4].mxu1 %vm634_vm1, %v809_v23 }
  0xf7   : > { %1452 = vmatprep.mubr.msk.bf16.mxu1 %vm1524_vm0, %v1523_v2  ;;  %v885_v51 = vsel %vm883_vm4, %v879_v50, 0  ;;  %1449 = vmatpush3.bf16.msra.mxu1 %v1493_v52 }
  0xf8   : > { %1443 = vmatpush3.bf16.msra.mxu0 %v885_v51  ;;  %1450 = vmatprep.subr.bf16.mxu1 %v1523_v2 }
  0xf9   : > { %1456 = vmatprep.subr.bf16.mxu0 %v1523_v2 }
  0xfb   : > { %1451 = vmatpush3.bf16.msra.mxu1 %v1494_v57 }
  0xfc   : > { %1464 = vmatprep.subr.bf16.mxu1 %v1523_v2 }
 0x1c9   : > { %v860_v33 = vpop.f32.mrb[4].mxu1 }
 0x1ca   : > { %v861_v34 = vadd.f32 %v860_v33, %v818_v32  ;;  %v1440_v35 = vpop.f32.mrb[5].mxu1 }
 0x1cb   : > { %v863_v36 = vpop.f32.mrb[6].mxu1 }
 0x1cc   : > { %v1441_v37 = vpop.f32.mrb[7].mxu1  ;;  %v867_v38 = vsel %vm866_vm3, %v861_v34, -inf }
 0x1cd   : > { %868 = vmax.xlane.f32.xlu0 %v867_v38 }
 0x25a   : > { %v869_v39 = vpop.xlane.xlu0 %868 }
 0x25b   : > { %v870_v40 = vsub.f32 %v861_v34, %v869_v39 }
 0x25d   : > { %v871_v41 = vmul.f32 1.442695, %v870_v40 }
 0x25f   : > { %1501 = vpow2.f32 %v871_v41 }
 0x269   : > { %v1502_v42 = vpop.eup %1501 }
 0x26a   : > { %v873_v43 = vsel %vm866_vm3, %v1502_v42, 0.0 }
 0x26b   : > { %874 = vadd.xlane.f32.xlu0 %v873_v43 }
 0x2f8   : > { %v875_v53 = vpop.xlane.xlu0 %874 }
 0x2f9   : > { %1503 = vrcp.f32 %v875_v53 }
 0x303   : > { %v1504_v54 = vpop.eup %1503 }
 0x304   : > { %v877_v55 = vmul.f32 %v1504_v54, %v1502_v42 }
 0x306   : > { %v878_v56 = vpack.c.bf16 %v877_v55, %v877_v55 }
 0x308   : > { %1445 = vmatmul.mubr.msk.bf16.vlgmr.msra.gmra.mrb[8].mxu0 %vm866_vm3, %v878_v56 }
 0x309   : > { %1460 = vmatprep.mubr.msk.bf16.mxu0 %vm1524_vm0, %v1523_v2  ;;  %1457 = vmatpush3.bf16.msra.mxu0 %v1495_v14 }
 0x30a   : > { %1458 = vmatprep.subr.bf16.mxu0 %v1523_v2 }
 0x3db   : > { %v921_v58 = vpop.f32.mrb[8].mxu0 }
 0x3dc   : > { %v927_v59 = vpack.c.bf16 %v921_v58, %v921_v58  ;;  %v1446_v60 = vpop.f32.mrb[9].mxu0 }
 0x3dd   : > { %v924_v61 = vpop.f32.mrb[10].mxu0 }
 0x3de   : > { %v1447_v62 = vpop.f32.mrb[11].mxu0  ;;  %1453 = vmatmul.mubr.msk.bf16.vlgmr.msra.gmra.mrb[8].mxu1 %vm634_vm1, %v927_v59  ;;  %v1384_v61 = vld [vmem:[%s1797_s12] ss:$0 sm:$0xff] }
 0x3df   : > { %1472 = vmatprep.mubr.msk.bf16.mxu1 %vm1524_vm0, %v1523_v2  ;;  %1465 = vmatpush3.bf16.msra.mxu1 %v1497_v25 }
 0x3e0   : > { %1466 = vmatprep.subr.bf16.mxu1 %v1523_v2 }
 0x3e3   : > { %1467 = vmatpush3.bf16.msra.mxu1 %v1498_v26 }
 0x3e4   : > { %1468 = vmatprep.subr.bf16.mxu1 %v1523_v2 }
 0x3e7   : > { %1469 = vmatpush3.bf16.msra.mxu1 %v1499_v27 }
 0x3e8   : > { %1470 = vmatprep.subr.bf16.mxu1 %v1523_v2 }
 0x3eb   : > { %1471 = vmatpush3.bf16.msra.mxu1 %v1500_v28 }
 0x4b1   : > { %v988_v0 = vpop.f32.mrb[8].mxu1 }
 0x4b2   : > { %v989_v1 = vadd.f32 %v1368_v63, %v988_v0  ;;  %v1454_v3 = vpop.f32.mrb[9].mxu1  ;;  %v1385_v63 = vld [vmem:[%s1798_s13] ss:$0 sm:$0xff] }
 0x4b3   : > { %v991_v4 = vpop.f32.mrb[10].mxu1 }
 0x4b4   : > { %v1455_v5 = vpop.f32.mrb[11].mxu1  ;;  %v994_v7 = vadd.f32 %v989_v1, %v1659_v6  ;;  %v1496_v6 = vld [vmem:[%s1793_s8 + $0x8] sm:$0xff]   ;;  %v1215_v1 = vld [vmem:[%s1799_s14] sm:$0x1] }
 0x4b5   : > { %1459 = vmatpush3.bf16.msra.mxu0 %v1496_v6 }
 0x4b6   : > { %v997_v8 = vsel %vm634_vm1, %v994_v7, 0.0 }
 0x4b7   : > { %998 = vadd.xlane.f32.xlu1 %v997_v8 }
 0x544   : > { %v999_v9 = vpop.xlane.xlu1 %998 }
 0x545   : > { %v1001_v10 = vmul.f32 0.03125, %v999_v9 }
 0x547   : > { %v1002_v11 = vsub.f32 %v994_v7, %v1001_v10  ;;  %v1221_v7 = vld [vmem:[#allocation2] sm:$0x1] }
 0x549   : > { %v1003_v12 = vmul.f32 %v1002_v11, %v1002_v11 }
 0x54b   : > { %v1004_v13 = vsel %vm634_vm1, %v1003_v12, 0.0 }
 0x54c   : > { %1005 = vadd.xlane.f32.xlu1 %v1004_v13 }
 0x5d9   : > { %v1006_v15 = vpop.xlane.xlu1 %1005 }
 0x5da   : > { %v1007_v16 = vmul.f32 0.03125, %v1006_v15 }
 0x5dc   : > { %v1008_v17 = vadd.f32 1e-12, %v1007_v16 }
 0x5de   : > { %1505 = vrsqrt.f32 %v1008_v17 }
 0x5e8   : > { %v1506_v18 = vpop.eup %1505 }
 0x5e9   : > { %v1010_v20 = vmul.f32 %v1506_v18, %v1002_v11  ;;  %v1225_v18 = vld [vmem:[%s601_s28] sm:$0x1] }
 0x5eb   : > { %v1017_v22 = vmul.f32 %v1372_v19, %v1010_v20 }
 0x5ed   : > { %v1024_v23 = vadd.f32 %v1373_v21, %v1017_v22  ;;  %v1242_v22 = vsub.f32 1.0, %v1225_v18 }
 0x5ef   : > { %v1025_v24 = vpack.c.bf16 %v1024_v23, %v1024_v23 }
 0x5f1   : > { %1461 = vmatmul.mubr.msk.bf16.vlgmr.msra.gmra.mrb[12].mxu0 %vm634_vm1, %v1025_v24 }
 0x6c4   : > { %v1086_v30 = vpop.f32.mrb[12].mxu0 }
 0x6c5   : > { %v1087_v31 = vadd.f32 %v1374_v29, %v1086_v30  ;;  %v1462_v32 = vpop.f32.mrb[13].mxu0 }
 0x6c6   : > { %v1089_v33 = vpop.f32.mrb[14].mxu0 }
 0x6c7   : > { %v1093_v34 = vmul.f32 0.044715, %v1087_v31  ;;  %v1463_v35 = vpop.f32.mrb[15].mxu0  ;;  %v1092_v41 = vmul.f32 0.5, %v1087_v31 }
 0x6c9   : > { %v1094_v36 = vmul.f32 %v1093_v34, %v1087_v31 }
 0x6cb   : > { %v1095_v37 = vmul.f32 %v1094_v36, %v1087_v31 }
 0x6cd   : > { %v1096_v38 = vadd.f32 %v1095_v37, %v1087_v31 }
 0x6cf   : > { %v1097_v39 = vmul.f32 0.7978846, %v1096_v38 }
 0x6d1   : > { %1507 = vtanh.f32 %v1097_v39 }
 0x6db   : > { %v1508_v40 = vpop.eup %1507 }
 0x6dc   : > { %v1099_v42 = vadd.f32 1.0, %v1508_v40 }
 0x6de   : > { %v1100_v2 = vmul.f32 %v1099_v42, %v1092_v41 }
 0x6e0   : > { %v1101_v43 = vpack.c.bf16 %v1100_v2, %v1100_v2 }
 0x6e2   : > { %1473 = vmatmul.mubr.msk.bf16.vlgmr.msra.gmra.mrb[12].mxu1 %vm1141_vm5, %v1101_v43 }
 0x7b5   : > { %v1179_v45 = vpop.f32.mrb[12].mxu1 }
 0x7b6   : > { %v1180_v46 = vadd.f32 %v1378_v44, %v1179_v45  ;;  %v1474_v47 = vpop.f32.mrb[13].mxu1 }
 0x7b7   : > { %v1182_v48 = vpop.f32.mrb[14].mxu1 }
 0x7b8   : > { %v1475_v49 = vpop.f32.mrb[15].mxu1  ;;  %v1185_v50 = vadd.f32 %v1180_v46, %v1024_v23  ;;  %v1244_v23 = vadd.f32 1.0, %v1225_v18 }
 0x7ba   : > { %v1188_v51 = vsel %vm634_vm1, %v1185_v50, 0.0 }
 0x7bb   : > { %1189 = vadd.xlane.f32.xlu0 %v1188_v51 }
 0x848   : > { %v1190_v52 = vpop.xlane.xlu0 %1189 }
 0x849   : > { %v1191_v53 = vmul.f32 0.03125, %v1190_v52 }
 0x84b   : > { %v1192_v54 = vsub.f32 %v1185_v50, %v1191_v53 }
 0x84d   : > { %v1193_v55 = vmul.f32 %v1192_v54, %v1192_v54 }
 0x84f   : > { %v1194_v56 = vsel %vm634_vm1, %v1193_v55, 0.0 }
 0x850   : > { %1195 = vadd.xlane.f32.xlu1 %v1194_v56 }
 0x8dd   : > { %v1196_v57 = vpop.xlane.xlu1 %1195 }
 0x8de   : > { %v1197_v58 = vmul.f32 0.03125, %v1196_v57 }
 0x8e0   : > { %v1198_v59 = vadd.f32 1e-12, %v1197_v58 }
 0x8e2   : > { %1509 = vrsqrt.f32 %v1198_v59 }
 0x8ec   : > { %v1510_v60 = vpop.eup %1509 }
 0x8ed   : > { %v1200_v62 = vmul.f32 %v1510_v60, %v1192_v54 }
 0x8ef   : > { %v1207_v0 = vmul.f32 %v1384_v61, %v1200_v62 }
 0x8f1   : > { %v1214_v3 = vadd.f32 %v1385_v63, %v1207_v0 }
 0x8f3   : > { %v1216_v4 = vmul.f32 %v1215_v1, %v1214_v3 }
 0x8f5   : > { %v1218_v5 = vsel %vm1217_vm6, %v1216_v4, 0.0 }
 0x8f6   : > { %1219 = vadd.xlane.f32.xlu0 %v1218_v5 }
 0x983   : > { %v1220_v8 = vpop.xlane.xlu0 %1219 }
 0x984   : > { %v1222_v9 = vadd.f32 %v1221_v7, %v1220_v8 }
 0x986   : > { %1224 = vst.msk [vmem:[%s604_s25] sm:$0x1] %vm1223_vm7, %v1222_v9  ;;  %v1228_v10 = vand.u32 2147483647, %v1222_v9  ;;  %v1226_v16 = vsub.f32 0.0, %v1222_v9  ;;  %v1243_v27 = vmul.f32 %v1242_v22, %v1222_v9 }
 0x988   : > { %v1229_v11 = vsub.f32 0.0, %v1228_v10  ;;  %v1227_v24 = vmax.f32 %v1226_v16, 0.0 }
 0x98a   : > { %v1230_v12 = vmul.f32 1.442695, %v1229_v11 }
 0x98c   : > { %1511 = vpow2.f32 %v1230_v12 }
 0x996   : > { %v1512_v13 = vpop.eup %1511 }
 0x997   : > { %v1232_v14 = vadd.f32 1.0, %v1512_v13  ;;  %v1235_v6 = vmul.f32 -0.5, %v1512_v13  ;;  %v1238_v17 = vand.u32 2147483647, %v1512_v13 }
 0x999   : > { %1513 = vlog2.f32 %v1232_v14  ;;  %v1236_v15 = vadd.f32 1.0, %v1235_v6  ;;  %vm1239_vm8 = vcmp.lt.f32.partialorder %v1238_v17, 0.0004427343 }
 0x99b   : > { %v1237_v21 = vmul.f32 %v1512_v13, %v1236_v15 }
 0x9a3   : > { %v1514_v19 = vpop.eup %1513 }
 0x9a4   : > { %v1234_v20 = vmul.f32 0.6931472, %v1514_v19 }
 0x9a6   : > { %v1240_v25 = vsel %vm1239_vm8, %v1237_v21, %v1234_v20 }
 0x9a7   : > { %v1241_v26 = vadd.f32 %v1240_v25, %v1227_v24 }
 0x9a9   : > { %v1245_v28 = vmul.f32 %v1244_v23, %v1241_v26 }
 0x9ab   : > { %v1246_v29 = vadd.f32 %v1245_v28, %v1243_v27 }
 0x9ad   : > { %1247 = vst.msk [vmem:[%s607_s15] sm:$0x1] %vm1223_vm7, %v1246_v29 }
 0x9ae PF: > { %s31_s29 = sadd.s32 1, %s1521_s29  }
 0x9af   : > { %p28_p4 = scmp.ge.s32.totalorder %s31_s29, 4  }
 0x9b1   :  { %30 = sbr.rel (!%p28_p4) target bundleno = 4 (0x4), region = 140 }

</bundles_post_ra>
